<compile_context>
chip_gen: v7x
topology: tpu7x:2x2x1
jax: 0.10.0
libtpu: 0.0.40
codegen_flags: <defaults>
</compile_context>

<pallas_src>
import functools

import jax
import jax.numpy as jnp
from jax.experimental import pallas as pl
from jax.experimental.pallas import tpu as pltpu


NEG_SLOPE = 0.01   # nn.LeakyReLU default negative_slope
LANE = 128         # TPU lane width; hidden feature dims are padded to this


def _round_up(n, m):
    return ((n + m - 1) // m) * m


def _leaky_relu(x):
    return jnp.where(x > 0, x, NEG_SLOPE * x)


def dnn5_kernel(x_ref,
                w1_ref, b1_ref, w2_ref, b2_ref, w3_ref, b3_ref,
                w4_ref, b4_ref, w5_ref, b5_ref, w6_ref, b6_ref,
                o_ref, xpad_ref):
    """One batch tile through all 6 layers.

    x_ref    : [tile_b, in_size]   unpadded input features (compute dtype)
    w*_ref   : [K_pad, N_pad]      lane-padded weights (compute dtype)
    b*_ref   : [1, N_pad]          lane-padded biases
    o_ref    : [tile_b, out_size]  unpadded output features (compute dtype)
    xpad_ref : [tile_b, IN_PAD]    VMEM scratch: x zero-extended to 128 lanes
    """
    cdt = w1_ref.dtype
    n_in = x_ref.shape[1]
    in_pad = xpad_ref.shape[1]

    # Zero-extend the input block to the lane-padded width expected by w1.
    # NOTE: re-written every step.  With a "parallel" batch grid each
    # TensorCore gets its own scratch and may start at program_id > 0, so a
    # one-time `pl.when(program_id == 0)` init would be unsound.  The full
    # zero + prefix store is only ~tile_b*128 elements (a few hundred vst's).
    if n_in < in_pad:
        xpad_ref[...] = jnp.zeros_like(xpad_ref)
    xpad_ref[:, :n_in] = x_ref[...].astype(cdt)

    def layer(h, w_ref, b_ref, activate):
        z = jnp.dot(h, w_ref[...], preferred_element_type=jnp.float32)
        z = z + b_ref[...].astype(jnp.float32)
        if activate:
            z = _leaky_relu(z)
        return z

    h = xpad_ref[...]
    h = layer(h, w1_ref, b1_ref, True).astype(cdt)
    h = layer(h, w2_ref, b2_ref, True).astype(cdt)
    h = layer(h, w3_ref, b3_ref, True).astype(cdt)
    h = layer(h, w4_ref, b4_ref, True).astype(cdt)
    h = layer(h, w5_ref, b5_ref, True).astype(cdt)
    y = layer(h, w6_ref, b6_ref, False)          # [tile_b, OUT_PAD], f32

    # Drop padded lanes and cast; accumulation stayed in f32 up to here.
    o_ref[...] = y[:, :o_ref.shape[1]].astype(o_ref.dtype)


def prepare_params(params, compute_dtype=jnp.bfloat16):
    """Transpose/pad the 6 (W, b) pairs ONCE; cache the result and reuse.

    params: sequence of (W [fan_in, fan_out], b [fan_out] or [1, fan_out]).
    Returns a flat tuple (w1, b1, ..., w6, b6) with both weight dims padded to
    multiples of 128 lanes.  Zero padding is numerically exact: LeakyReLU(0)=0
    and zero rows/cols contribute nothing to downstream matmuls.
    """
    flat = []
    for w, b in params:
        k, n = w.shape
        k_p, n_p = _round_up(k, LANE), _round_up(n, LANE)
        w_p = jnp.zeros((k_p, n_p), compute_dtype).at[:k, :n].set(
            w.astype(compute_dtype))
        b_p = jnp.zeros((1, n_p), compute_dtype).at[:, :n].set(
            jnp.reshape(b, (1, n)).astype(compute_dtype))
        flat += [w_p, b_p]
    return tuple(flat)


@functools.partial(jax.jit, static_argnames=("out_size", "tile_b"))
def dnn5_forward(x, flat_params, *, out_size, tile_b=2048):
    """x: [B, in_size]. flat_params: output of prepare_params.
    Returns [B, out_size] in the params' (compute) dtype."""
    B, in_size = x.shape
    cdt = flat_params[0].dtype
    in_pad = flat_params[0].shape[0]
    assert in_size <= in_pad, "x feature dim exceeds prepared first-layer K"

    x = x.astype(cdt)

    # ---- batch tiling --------------------------------------------------
    b_round = _round_up(B, 8)
    tile = _round_up(min(tile_b, b_round), 8)
    # Ensure >= 2 grid steps whenever the batch allows it so the "parallel"
    # batch axis can be sharded across both v7x TensorCores.
    if b_round >= 16 and pl.cdiv(B, tile) < 2:
        tile = _round_up(pl.cdiv(B, 2), 8)
    grid = (pl.cdiv(B, tile),)

    # ---- specs: batch-tiled x/out, weight-resident params ---------------
    in_specs = [pl.BlockSpec((tile, in_size), lambda i: (i, 0))]
    for p in flat_params:
        in_specs.append(pl.BlockSpec(p.shape, lambda i: (0, 0)))
    out_specs = pl.BlockSpec((tile, out_size), lambda i: (i, 0))
    scratch_shapes = [pltpu.VMEM((tile, in_pad), cdt)]

    # ---- VMEM budget (double-buffered activation tiles + resident params) --
    itemsize = flat_params[0].dtype.itemsize
    param_bytes = sum(int(p.size) * p.dtype.itemsize for p in flat_params)
    out_pad = _round_up(out_size, LANE)
    vmem_est = (2 * tile * in_pad * itemsize        # x tile (double-buffered, lane-padded layout)
                + 2 * tile * out_pad * itemsize     # out tile (double-buffered, lane-padded layout)
                + tile * in_pad * itemsize          # xpad scratch
                + 2 * param_bytes                   # resident weights/biases
                + 6 * tile * LANE * 4               # live f32 intermediates / MXU temps
                + (2 << 20))                        # slack
    vmem_limit = int(min(max(vmem_est, 16 << 20), 96 << 20))

    # ---- advisory cost estimate -----------------------------------------
    n_layers = len(flat_params) // 2
    flops = 2 * B * sum(int(flat_params[2 * i].shape[0] * flat_params[2 * i].shape[1])
                        for i in range(n_layers))
    bytes_accessed = int(x.size) * itemsize + param_bytes + B * out_size * itemsize
    cost = pl.CostEstimate(flops=flops, transcendentals=0,
                           bytes_accessed=int(bytes_accessed))

    return pl.pallas_call(
        dnn5_kernel,
        out_shape=jax.ShapeDtypeStruct((B, out_size), cdt),
        grid=grid,
        in_specs=in_specs,
        out_specs=out_specs,
        scratch_shapes=scratch_shapes,
        compiler_params=pltpu.CompilerParams(
            dimension_semantics=("parallel",),   # megacore-shard batch (v7x)
            vmem_limit_bytes=vmem_limit,
        ),
        cost_estimate=cost,
    )(x, *flat_params)


def init_linear(key, fan_in, fan_out):
    """Mimics nn.Linear init: U(-1/sqrt(fan_in), 1/sqrt(fan_in)).
    Weight returned pre-transposed to [fan_in, fan_out]; bias [1, fan_out]."""
    kw, kb = jax.random.split(key)
    bound = 1.0 / float(fan_in) ** 0.5
    w = jax.random.uniform(kw, (fan_in, fan_out), jnp.float32, -bound, bound)
    b = jax.random.uniform(kb, (1, fan_out), jnp.float32, -bound, bound)
    return w, b


if __name__ == "__main__":
    # DNNModel5(input_size=16, hidden1..5=32, out_size=8)
    sizes = [16, 32, 32, 32, 32, 32, 8]

    key = jax.random.PRNGKey(0)
    keys = jax.random.split(key, 8)
    params = [init_linear(keys[i], sizes[i], sizes[i + 1]) for i in range(6)]

    def ref_forward(x, params):
        h = x
        for i, (w, b) in enumerate(params):
            h = h @ w + b
            if i < len(params) - 1:
                h = jnp.where(h > 0, h, NEG_SLOPE * h)
        return h

    # ---- run 1: small batch, f32 storage, tight numerical check ----------
    x_small = jax.random.normal(keys[6], (8, sizes[0]), jnp.float32)
    flat_f32 = prepare_params(params, jnp.float32)            # pad once, reuse
    y_small = jax.block_until_ready(
        dnn5_forward(x_small, flat_f32, out_size=sizes[-1]))
    ref_small = ref_forward(x_small, params)
    assert y_small.shape == (8, sizes[-1])
    assert jnp.allclose(y_small, ref_small, atol=1e-5, rtol=1e-5)

    # ---- run 2: larger batch, bf16 storage (f32 MXU accumulation) --------
    # Exercises the >=2-step "parallel" grid and the masked partial last block.
    x_big = jax.random.normal(keys[7], (1000, sizes[0]), jnp.float32)
    flat_bf16 = prepare_params(params, jnp.bfloat16)          # pad once, reuse
    y_big = jax.block_until_ready(
        dnn5_forward(x_big, flat_bf16, out_size=sizes[-1]))
    ref_big = ref_forward(x_big, params)
    assert y_big.shape == (1000, sizes[-1])
    assert jnp.allclose(y_big.astype(jnp.float32), ref_big, atol=5e-2, rtol=5e-2)

    print("KERNEL_OK")
</pallas_src>

<mosaic_0001>
module attributes {stable_mosaic.version = 11 : i64} {
  func.func @dnn5_kernel(%arg0: i32, %arg1: memref<8x16xf32, #tpu.memory_space<vmem>>, %arg2: memref<128x128xf32, #tpu.memory_space<vmem>>, %arg3: memref<1x128xf32, #tpu.memory_space<vmem>>, %arg4: memref<128x128xf32, #tpu.memory_space<vmem>>, %arg5: memref<1x128xf32, #tpu.memory_space<vmem>>, %arg6: memref<128x128xf32, #tpu.memory_space<vmem>>, %arg7: memref<1x128xf32, #tpu.memory_space<vmem>>, %arg8: memref<128x128xf32, #tpu.memory_space<vmem>>, %arg9: memref<1x128xf32, #tpu.memory_space<vmem>>, %arg10: memref<128x128xf32, #tpu.memory_space<vmem>>, %arg11: memref<1x128xf32, #tpu.memory_space<vmem>>, %arg12: memref<128x128xf32, #tpu.memory_space<vmem>>, %arg13: memref<1x128xf32, #tpu.memory_space<vmem>>, %arg14: memref<8x8xf32, #tpu.memory_space<vmem>>, %arg15: memref<8x128xf32, #tpu.memory_space<vmem>>) attributes {dimension_semantics = [#tpu.dimension_semantics<parallel>], iteration_bounds = array<i64: 1>, scalar_prefetch = 0 : i64, scratch_operands = 1 : i64, tpu.core_type = #tpu.core_type<tc>, window_params = [{transform_indices = @transform_0, window_bounds = array<i64: 8, 16>}, {pipeline_mode = #tpu.pipeline_mode<synchronous>, transform_indices = @transform_1, window_bounds = array<i64: 128, 128>}, {pipeline_mode = #tpu.pipeline_mode<synchronous>, transform_indices = @transform_2, window_bounds = array<i64: 1, 128>}, {pipeline_mode = #tpu.pipeline_mode<synchronous>, transform_indices = @transform_3, window_bounds = array<i64: 128, 128>}, {pipeline_mode = #tpu.pipeline_mode<synchronous>, transform_indices = @transform_4, window_bounds = array<i64: 1, 128>}, {pipeline_mode = #tpu.pipeline_mode<synchronous>, transform_indices = @transform_5, window_bounds = array<i64: 128, 128>}, {pipeline_mode = #tpu.pipeline_mode<synchronous>, transform_indices = @transform_6, window_bounds = array<i64: 1, 128>}, {pipeline_mode = #tpu.pipeline_mode<synchronous>, transform_indices = @transform_7, window_bounds = array<i64: 128, 128>}, {pipeline_mode = #tpu.pipeline_mode<synchronous>, transform_indices = @transform_8, window_bounds = array<i64: 1, 128>}, {pipeline_mode = #tpu.pipeline_mode<synchronous>, transform_indices = @transform_9, window_bounds = array<i64: 128, 128>}, {pipeline_mode = #tpu.pipeline_mode<synchronous>, transform_indices = @transform_10, window_bounds = array<i64: 1, 128>}, {pipeline_mode = #tpu.pipeline_mode<synchronous>, transform_indices = @transform_11, window_bounds = array<i64: 128, 128>}, {pipeline_mode = #tpu.pipeline_mode<synchronous>, transform_indices = @transform_12, window_bounds = array<i64: 1, 128>}, {transform_indices = @transform_13, window_bounds = array<i64: 8, 8>}]} {
    %cst = arith.constant 0.000000e+00 : f32
    %0 = vector.broadcast %cst : f32 to vector<8x128xf32>
    %c0 = arith.constant 0 : index
    %c0_0 = arith.constant 0 : index
    %1 = vector.load %arg15[%c0, %c0_0] : memref<8x128xf32, #tpu.memory_space<vmem>>, vector<8x128xf32>
    tpu.vector_store %arg15[%c0, %c0_0], %0 {strides = array<i32>} : memref<8x128xf32, #tpu.memory_space<vmem>>, vector<8x128xf32>,
    %c0_1 = arith.constant 0 : index
    %c0_2 = arith.constant 0 : index
    %2 = vector.load %arg1[%c0_1, %c0_2] : memref<8x16xf32, #tpu.memory_space<vmem>>, vector<8x16xf32>
    %c0_3 = arith.constant 0 : index
    %c0_4 = arith.constant 0 : index
    %3 = vector.load %arg15[%c0_3, %c0_4] : memref<8x128xf32, #tpu.memory_space<vmem>>, vector<8x16xf32>
    tpu.vector_store %arg15[%c0_3, %c0_4], %2 {strides = array<i32>} : memref<8x128xf32, #tpu.memory_space<vmem>>, vector<8x16xf32>,
    %c0_5 = arith.constant 0 : index
    %c0_6 = arith.constant 0 : index
    %4 = vector.load %arg15[%c0_5, %c0_6] : memref<8x128xf32, #tpu.memory_space<vmem>>, vector<8x128xf32>
    %c0_7 = arith.constant 0 : index
    %c0_8 = arith.constant 0 : index
    %5 = vector.load %arg2[%c0_7, %c0_8] : memref<128x128xf32, #tpu.memory_space<vmem>>, vector<128x128xf32>
    %cst_9 = arith.constant dense<0.000000e+00> : vector<8x128xf32>
    %6 = tpu.matmul %4, %5, %cst_9 {dimension_numbers = #tpu.dot_dimension_numbers<[1], [0], [0], [1], [0, 0, 1, 1], [], []>} : vector<8x128xf32>, vector<128x128xf32>, vector<8x128xf32> -> vector<8x128xf32>
    %c0_10 = arith.constant 0 : index
    %c0_11 = arith.constant 0 : index
    %7 = vector.load %arg3[%c0_10, %c0_11] : memref<1x128xf32, #tpu.memory_space<vmem>>, vector<1x128xf32>
    %8 = vector.broadcast %7 : vector<1x128xf32> to vector<8x128xf32>
    %9 = arith.addf %6, %8 : vector<8x128xf32>
    %cst_12 = arith.constant 0.000000e+00 : f32
    %10 = vector.broadcast %cst_12 : f32 to vector<8x128xf32>
    %11 = arith.cmpf ogt, %9, %10 : vector<8x128xf32>
    %cst_13 = arith.constant 0.00999999977 : f32
    %12 = vector.broadcast %cst_13 : f32 to vector<8x128xf32>
    %13 = arith.mulf %12, %9 : vector<8x128xf32>
    %14 = arith.select %11, %9, %13 : vector<8x128xi1>, vector<8x128xf32>
    %c0_14 = arith.constant 0 : index
    %c0_15 = arith.constant 0 : index
    %15 = vector.load %arg4[%c0_14, %c0_15] : memref<128x128xf32, #tpu.memory_space<vmem>>, vector<128x128xf32>
    %cst_16 = arith.constant dense<0.000000e+00> : vector<8x128xf32>
    %16 = tpu.matmul %14, %15, %cst_16 {dimension_numbers = #tpu.dot_dimension_numbers<[1], [0], [0], [1], [0, 0, 1, 1], [], []>} : vector<8x128xf32>, vector<128x128xf32>, vector<8x128xf32> -> vector<8x128xf32>
    %c0_17 = arith.constant 0 : index
    %c0_18 = arith.constant 0 : index
    %17 = vector.load %arg5[%c0_17, %c0_18] : memref<1x128xf32, #tpu.memory_space<vmem>>, vector<1x128xf32>
    %18 = vector.broadcast %17 : vector<1x128xf32> to vector<8x128xf32>
    %19 = arith.addf %16, %18 : vector<8x128xf32>
    %cst_19 = arith.constant 0.000000e+00 : f32
    %20 = vector.broadcast %cst_19 : f32 to vector<8x128xf32>
    %21 = arith.cmpf ogt, %19, %20 : vector<8x128xf32>
    %cst_20 = arith.constant 0.00999999977 : f32
    %22 = vector.broadcast %cst_20 : f32 to vector<8x128xf32>
    %23 = arith.mulf %22, %19 : vector<8x128xf32>
    %24 = arith.select %21, %19, %23 : vector<8x128xi1>, vector<8x128xf32>
    %c0_21 = arith.constant 0 : index
    %c0_22 = arith.constant 0 : index
    %25 = vector.load %arg6[%c0_21, %c0_22] : memref<128x128xf32, #tpu.memory_space<vmem>>, vector<128x128xf32>
    %cst_23 = arith.constant dense<0.000000e+00> : vector<8x128xf32>
    %26 = tpu.matmul %24, %25, %cst_23 {dimension_numbers = #tpu.dot_dimension_numbers<[1], [0], [0], [1], [0, 0, 1, 1], [], []>} : vector<8x128xf32>, vector<128x128xf32>, vector<8x128xf32> -> vector<8x128xf32>
    %c0_24 = arith.constant 0 : index
    %c0_25 = arith.constant 0 : index
    %27 = vector.load %arg7[%c0_24, %c0_25] : memref<1x128xf32, #tpu.memory_space<vmem>>, vector<1x128xf32>
    %28 = vector.broadcast %27 : vector<1x128xf32> to vector<8x128xf32>
    %29 = arith.addf %26, %28 : vector<8x128xf32>
    %cst_26 = arith.constant 0.000000e+00 : f32
    %30 = vector.broadcast %cst_26 : f32 to vector<8x128xf32>
    %31 = arith.cmpf ogt, %29, %30 : vector<8x128xf32>
    %cst_27 = arith.constant 0.00999999977 : f32
    %32 = vector.broadcast %cst_27 : f32 to vector<8x128xf32>
    %33 = arith.mulf %32, %29 : vector<8x128xf32>
    %34 = arith.select %31, %29, %33 : vector<8x128xi1>, vector<8x128xf32>
    %c0_28 = arith.constant 0 : index
    %c0_29 = arith.constant 0 : index
    %35 = vector.load %arg8[%c0_28, %c0_29] : memref<128x128xf32, #tpu.memory_space<vmem>>, vector<128x128xf32>
    %cst_30 = arith.constant dense<0.000000e+00> : vector<8x128xf32>
    %36 = tpu.matmul %34, %35, %cst_30 {dimension_numbers = #tpu.dot_dimension_numbers<[1], [0], [0], [1], [0, 0, 1, 1], [], []>} : vector<8x128xf32>, vector<128x128xf32>, vector<8x128xf32> -> vector<8x128xf32>
    %c0_31 = arith.constant 0 : index
    %c0_32 = arith.constant 0 : index
    %37 = vector.load %arg9[%c0_31, %c0_32] : memref<1x128xf32, #tpu.memory_space<vmem>>, vector<1x128xf32>
    %38 = vector.broadcast %37 : vector<1x128xf32> to vector<8x128xf32>
    %39 = arith.addf %36, %38 : vector<8x128xf32>
    %cst_33 = arith.constant 0.000000e+00 : f32
    %40 = vector.broadcast %cst_33 : f32 to vector<8x128xf32>
    %41 = arith.cmpf ogt, %39, %40 : vector<8x128xf32>
    %cst_34 = arith.constant 0.00999999977 : f32
    %42 = vector.broadcast %cst_34 : f32 to vector<8x128xf32>
    %43 = arith.mulf %42, %39 : vector<8x128xf32>
    %44 = arith.select %41, %39, %43 : vector<8x128xi1>, vector<8x128xf32>
    %c0_35 = arith.constant 0 : index
    %c0_36 = arith.constant 0 : index
    %45 = vector.load %arg10[%c0_35, %c0_36] : memref<128x128xf32, #tpu.memory_space<vmem>>, vector<128x128xf32>
    %cst_37 = arith.constant dense<0.000000e+00> : vector<8x128xf32>
    %46 = tpu.matmul %44, %45, %cst_37 {dimension_numbers = #tpu.dot_dimension_numbers<[1], [0], [0], [1], [0, 0, 1, 1], [], []>} : vector<8x128xf32>, vector<128x128xf32>, vector<8x128xf32> -> vector<8x128xf32>
    %c0_38 = arith.constant 0 : index
    %c0_39 = arith.constant 0 : index
    %47 = vector.load %arg11[%c0_38, %c0_39] : memref<1x128xf32, #tpu.memory_space<vmem>>, vector<1x128xf32>
    %48 = vector.broadcast %47 : vector<1x128xf32> to vector<8x128xf32>
    %49 = arith.addf %46, %48 : vector<8x128xf32>
    %cst_40 = arith.constant 0.000000e+00 : f32
    %50 = vector.broadcast %cst_40 : f32 to vector<8x128xf32>
    %51 = arith.cmpf ogt, %49, %50 : vector<8x128xf32>
    %cst_41 = arith.constant 0.00999999977 : f32
    %52 = vector.broadcast %cst_41 : f32 to vector<8x128xf32>
    %53 = arith.mulf %52, %49 : vector<8x128xf32>
    %54 = arith.select %51, %49, %53 : vector<8x128xi1>, vector<8x128xf32>
    %c0_42 = arith.constant 0 : index
    %c0_43 = arith.constant 0 : index
    %55 = vector.load %arg12[%c0_42, %c0_43] : memref<128x128xf32, #tpu.memory_space<vmem>>, vector<128x128xf32>
    %cst_44 = arith.constant dense<0.000000e+00> : vector<8x128xf32>
    %56 = tpu.matmul %54, %55, %cst_44 {dimension_numbers = #tpu.dot_dimension_numbers<[1], [0], [0], [1], [0, 0, 1, 1], [], []>} : vector<8x128xf32>, vector<128x128xf32>, vector<8x128xf32> -> vector<8x128xf32>
    %c0_45 = arith.constant 0 : index
    %c0_46 = arith.constant 0 : index
    %57 = vector.load %arg13[%c0_45, %c0_46] : memref<1x128xf32, #tpu.memory_space<vmem>>, vector<1x128xf32>
    %58 = vector.broadcast %57 : vector<1x128xf32> to vector<8x128xf32>
    %59 = arith.addf %56, %58 : vector<8x128xf32>
    %60 = vector.extract_strided_slice %59 {offsets = [0, 0], sizes = [8, 8], strides = [1, 1]} : vector<8x128xf32> to vector<8x8xf32>
    %c0_47 = arith.constant 0 : index
    %c0_48 = arith.constant 0 : index
    %61 = vector.load %arg14[%c0_47, %c0_48] : memref<8x8xf32, #tpu.memory_space<vmem>>, vector<8x8xf32>
    tpu.vector_store %arg14[%c0_47, %c0_48], %60 {strides = array<i32>} : memref<8x8xf32, #tpu.memory_space<vmem>>, vector<8x8xf32>,
    return
  }
  func.func @transform_0(%arg0: i32) -> (i32, i32) {
    %c0_i32 = arith.constant 0 : i32
    %c0_i32_0 = arith.constant 0 : i32
    return %arg0, %c0_i32 : i32, i32
  }
  func.func @transform_1(%arg0: i32) -> (i32, i32) {
    %c0_i32 = arith.constant 0 : i32
    %c0_i32_0 = arith.constant 0 : i32
    %c0_i32_1 = arith.constant 0 : i32
    return %c0_i32, %c0_i32_0 : i32, i32
  }
  func.func @transform_2(%arg0: i32) -> (i32, i32) {
    %c0_i32 = arith.constant 0 : i32
    %c0_i32_0 = arith.constant 0 : i32
    %c0_i32_1 = arith.constant 0 : i32
    return %c0_i32, %c0_i32_0 : i32, i32
  }
  func.func @transform_3(%arg0: i32) -> (i32, i32) {
    %c0_i32 = arith.constant 0 : i32
    %c0_i32_0 = arith.constant 0 : i32
    %c0_i32_1 = arith.constant 0 : i32
    return %c0_i32, %c0_i32_0 : i32, i32
  }
  func.func @transform_4(%arg0: i32) -> (i32, i32) {
    %c0_i32 = arith.constant 0 : i32
    %c0_i32_0 = arith.constant 0 : i32
    %c0_i32_1 = arith.constant 0 : i32
    return %c0_i32, %c0_i32_0 : i32, i32
  }
  func.func @transform_5(%arg0: i32) -> (i32, i32) {
    %c0_i32 = arith.constant 0 : i32
    %c0_i32_0 = arith.constant 0 : i32
    %c0_i32_1 = arith.constant 0 : i32
    return %c0_i32, %c0_i32_0 : i32, i32
  }
  func.func @transform_6(%arg0: i32) -> (i32, i32) {
    %c0_i32 = arith.constant 0 : i32
    %c0_i32_0 = arith.constant 0 : i32
    %c0_i32_1 = arith.constant 0 : i32
    return %c0_i32, %c0_i32_0 : i32, i32
  }
  func.func @transform_7(%arg0: i32) -> (i32, i32) {
    %c0_i32 = arith.constant 0 : i32
    %c0_i32_0 = arith.constant 0 : i32
    %c0_i32_1 = arith.constant 0 : i32
    return %c0_i32, %c0_i32_0 : i32, i32
  }
  func.func @transform_8(%arg0: i32) -> (i32, i32) {
    %c0_i32 = arith.constant 0 : i32
    %c0_i32_0 = arith.constant 0 : i32
    %c0_i32_1 = arith.constant 0 : i32
    return %c0_i32, %c0_i32_0 : i32, i32
  }
  func.func @transform_9(%arg0: i32) -> (i32, i32) {
    %c0_i32 = arith.constant 0 : i32
    %c0_i32_0 = arith.constant 0 : i32
    %c0_i32_1 = arith.constant 0 : i32
    return %c0_i32, %c0_i32_0 : i32, i32
  }
  func.func @transform_10(%arg0: i32) -> (i32, i32) {
    %c0_i32 = arith.constant 0 : i32
    %c0_i32_0 = arith.constant 0 : i32
    %c0_i32_1 = arith.constant 0 : i32
    return %c0_i32, %c0_i32_0 : i32, i32
  }
  func.func @transform_11(%arg0: i32) -> (i32, i32) {
    %c0_i32 = arith.constant 0 : i32
    %c0_i32_0 = arith.constant 0 : i32
    %c0_i32_1 = arith.constant 0 : i32
    return %c0_i32, %c0_i32_0 : i32, i32
  }
  func.func @transform_12(%arg0: i32) -> (i32, i32) {
    %c0_i32 = arith.constant 0 : i32
    %c0_i32_0 = arith.constant 0 : i32
    %c0_i32_1 = arith.constant 0 : i32
    return %c0_i32, %c0_i32_0 : i32, i32
  }
  func.func @transform_13(%arg0: i32) -> (i32, i32) {
    %c0_i32 = arith.constant 0 : i32
    %c0_i32_0 = arith.constant 0 : i32
    return %arg0, %c0_i32 : i32, i32
  }
}

</mosaic_0001>

<bundles_post_ra>
// kernel: dnn5_forward.1
= control target key start
LH: loop header
LB: loop body
LE: loop exit
PB: predicated region body
PF: predicated region fallthrough
CT: control target
= control target key end

     0   :  { %18 = vsyncpa [#allocation4], 0  ;;  %s1673_s0 = inlined_call_operand.hbm [shape: f32[8,16], index: 0, kind: input, shape index: {}]   ;;  %s1674_s1 = inlined_call_operand.hbm [shape: f32[128,128], index: 1, kind: input, shape index: {}]   ;;  %s1675_s2 = inlined_call_operand.vmem [shape: f32[1,128], index: 2, kind: input, shape index: {}]   ;;  %s1676_s3 = inlined_call_operand.hbm [shape: f32[128,128], index: 3, kind: input, shape index: {}]   ;;  %s1677_s4 = inlined_call_operand.vmem [shape: f32[1,128], index: 4, kind: input, shape index: {}]   ;;  %s1678_s5 = inlined_call_operand.hbm [shape: f32[128,128], index: 5, kind: input, shape index: {}]   ;;  %s1679_s6 = inlined_call_operand.vmem [shape: f32[1,128], index: 6, kind: input, shape index: {}]   ;;  %s1680_s7 = inlined_call_operand.hbm [shape: f32[128,128], index: 7, kind: input, shape index: {}]   ;;  %s1681_s8 = inlined_call_operand.vmem [shape: f32[1,128], index: 8, kind: input, shape index: {}]   ;;  %s1682_s9 = inlined_call_operand.hbm [shape: f32[128,128], index: 9, kind: input, shape index: {}]   ;;  %s1683_s10 = inlined_call_operand.vmem [shape: f32[1,128], index: 10, kind: input, shape index: {}]   ;;  %s1684_s11 = inlined_call_operand.hbm [shape: f32[128,128], index: 11, kind: input, shape index: {}]   ;;  %s1685_s12 = inlined_call_operand.vmem [shape: f32[1,128], index: 12, kind: input, shape index: {}]   ;;  %s1686_s13 = inlined_call_operand.hbm [shape: f32[8,8], index: 13, kind: output, shape index: {}]  }
   0x1   :  { %19 = vsyncpa [#allocation7], 0 }
   0x2   :  { %20 = vsyncpa [#allocation10], 0 }
   0x3   :  { %21 = vsyncpa [#allocation13], 0 }
   0x4   :  { %22 = vsyncpa [#allocation5], 0  ;;  %s1397_s25 = smov [#allocation6]   ;;  %s1211_s29 = scalar_lea.hbm %s1674_s1, 2048 }
   0x5   :  { %s38_s26 = sshll.u32 %s1397_s25, 4  ;;  %p1212_p0 = scmp.ne.s32.totalorder %s1674_s1, %s1211_s29  ;;  %s39_s26 = int_to_ptr.vmem [resolvable:$true] %s38_s26 }
   0x6   :  { %p1215_p1 = scmp.lt.u32.totalorder %s1211_s29, %s1674_s1 }
   0x8   :  { %p1217_p2 = pnand %p1215_p1, %p1212_p0 }
   0xa   :  { %1220 = shalt.err (!%p1217_p2)
}
   0xb   :  { %s1221_s17 = scalar_lea.vmem %s39_s26, 2048  ;;  %p1226_p4 = scmp.lt.s32.totalorder %s39_s26, %s39_s26 }
   0xc   :  { %p1222_p3 = scmp.ne.s32.totalorder %s39_s26, %s1221_s17  ;;  %p1227_p5 = scmp.lt.s32.totalorder %s1221_s17, %s1221_s17 }
   0xe   :  { %p1228_p6 = por %p1227_p5, %p1226_p4 }
  0x10   :  { %p1229_p7 = pnand %p1228_p6, %p1222_p3 }
  0x12   :  { %1232 = shalt.err (!%p1229_p7)
}
  0x13   :  { %s1398_s18 = smov 128   ;;  %s1399_s19 = smov 8  }
  0x14   :  { %44 = dma.hbm_to_vmem [thread:$0]  %s1674_s1, 2048, %s39_s26, [#allocation7], %s1398_s18, %s1398_s18, %s1399_s19  }
  0x15   :  { %s1400_s22 = smov [#allocation9]   ;;  %s1401_s24 = smov [#allocation12]  }
  0x16   :  { %s66_s23 = sshll.u32 %s1400_s22, 4  ;;  %s94_s25 = sshll.u32 %s1401_s24, 4  ;;  %s67_s23 = int_to_ptr.vmem [resolvable:$true] %s66_s23  ;;  %s95_s25 = int_to_ptr.vmem [resolvable:$true] %s94_s25 }
  0x17   :  { %s1233_s29 = scalar_lea.hbm %s1678_s5, 2048 }
  0x18   :  { %p1234_p8 = scmp.ne.s32.totalorder %s1678_s5, %s1233_s29  ;;  %p1237_p9 = scmp.lt.u32.totalorder %s1233_s29, %s1678_s5 }
  0x1a   :  { %p1239_p10 = pnand %p1237_p9, %p1234_p8 }
  0x1c   :  { %1242 = shalt.err (!%p1239_p10)
}
  0x1d   :  { %s1243_s1 = scalar_lea.vmem %s67_s23, 2048  ;;  %p1248_p12 = scmp.lt.s32.totalorder %s67_s23, %s67_s23 }
  0x1e   :  { %p1244_p11 = scmp.ne.s32.totalorder %s67_s23, %s1243_s1  ;;  %p1249_p13 = scmp.lt.s32.totalorder %s1243_s1, %s1243_s1 }
  0x20   :  { %p1250_p0 = por %p1249_p13, %p1248_p12 }
  0x22   :  { %p1251_p1 = pnand %p1250_p0, %p1244_p11 }
  0x24   :  { %1254 = shalt.err (!%p1251_p1)
}
  0x25   :  { %72 = dma.hbm_to_vmem [thread:$0]  %s1678_s5, 2048, %s67_s23, [#allocation10], %s1398_s18, %s1398_s18, %s1399_s19  }
  0x26   :  { %s1255_s22 = scalar_lea.hbm %s1682_s9, 2048 }
  0x27   :  { %p1256_p2 = scmp.ne.s32.totalorder %s1682_s9, %s1255_s22  ;;  %p1259_p3 = scmp.lt.u32.totalorder %s1255_s22, %s1682_s9 }
  0x29   :  { %p1261_p4 = pnand %p1259_p3, %p1256_p2 }
  0x2b   :  { %1264 = shalt.err (!%p1261_p4)
}
  0x2c   :  { %s1265_s30 = scalar_lea.vmem %s95_s25, 2048  ;;  %p1270_p6 = scmp.lt.s32.totalorder %s95_s25, %s95_s25 }
  0x2d   :  { %p1266_p5 = scmp.ne.s32.totalorder %s95_s25, %s1265_s30  ;;  %p1271_p7 = scmp.lt.s32.totalorder %s1265_s30, %s1265_s30 }
  0x2f   :  { %p1272_p8 = por %p1271_p7, %p1270_p6 }
  0x31   :  { %p1273_p9 = pnand %p1272_p8, %p1266_p5 }
  0x33   :  { %1276 = shalt.err (!%p1273_p9)
}
  0x34   :  { %100 = dma.hbm_to_vmem [thread:$0]  %s1682_s9, 2048, %s95_s25, [#allocation13], %s1398_s18, %s1398_s18, %s1399_s19  }
  0x35   :  { %s1402_s14 = smov [#allocation3]   ;;  %s1403_s16 = smov [#allocation8]  }
  0x36   :  { %s29_s15 = sshll.u32 %s1402_s14, 4  ;;  %s52_s1 = sshll.u32 %s1403_s16, 4  ;;  %s30_s15 = int_to_ptr.vmem [resolvable:$true] %s29_s15  ;;  %s53_s1 = int_to_ptr.vmem [resolvable:$true] %s52_s1 }
  0x37   :  { %s1277_s20 = scalar_lea.hbm %s1673_s0, 128 }
  0x38   :  { %p1278_p10 = scmp.ne.s32.totalorder %s1673_s0, %s1277_s20  ;;  %p1281_p11 = scmp.lt.u32.totalorder %s1277_s20, %s1673_s0 }
  0x3a   :  { %p1283_p12 = pnand %p1281_p11, %p1278_p10 }
  0x3c   :  { %1286 = shalt.err (!%p1283_p12)
}
  0x3d   :  { %s1287_s9 = scalar_lea.vmem %s30_s15, 128  ;;  %p1292_p0 = scmp.lt.s32.totalorder %s30_s15, %s30_s15 }
  0x3e   :  { %p1288_p13 = scmp.ne.s32.totalorder %s30_s15, %s1287_s9  ;;  %p1293_p1 = scmp.lt.s32.totalorder %s1287_s9, %s1287_s9 }
  0x40   :  { %p1294_p2 = por %p1293_p1, %p1292_p0 }
  0x42   :  { %p1295_p3 = pnand %p1294_p2, %p1288_p13 }
  0x44   :  { %1298 = shalt.err (!%p1295_p3)
}
  0x45   :  { %32 = dma.hbm_to_vmem [thread:$0]  %s1673_s0, 128, %s30_s15, [#allocation4]  }
  0x46   :  { %s1299_s5 = scalar_lea.hbm %s1676_s3, 2048 }
  0x47   :  { %p1300_p4 = scmp.ne.s32.totalorder %s1676_s3, %s1299_s5  ;;  %p1303_p5 = scmp.lt.u32.totalorder %s1299_s5, %s1676_s3 }
  0x49   :  { %p1305_p6 = pnand %p1303_p5, %p1300_p4 }
  0x4b   :  { %1308 = shalt.err (!%p1305_p6)
}
  0x4c   :  { %s1309_s17 = scalar_lea.vmem %s53_s1, 2048  ;;  %p1314_p8 = scmp.lt.s32.totalorder %s53_s1, %s53_s1 }
  0x4d   :  { %p1310_p7 = scmp.ne.s32.totalorder %s53_s1, %s1309_s17  ;;  %p1315_p9 = scmp.lt.s32.totalorder %s1309_s17, %s1309_s17 }
  0x4f   :  { %p1316_p10 = por %p1315_p9, %p1314_p8 }
  0x51   :  { %p1317_p11 = pnand %p1316_p10, %p1310_p7 }
  0x53   :  { %1320 = shalt.err (!%p1317_p11)
}
  0x54   :  { %58 = dma.hbm_to_vmem [thread:$0]  %s1676_s3, 2048, %s53_s1, [#allocation7], %s1398_s18, %s1398_s18, %s1399_s19  }
  0x55   :  { %s1404_s20 = smov [#allocation11]   ;;  %s1405_s22 = smov [#allocation14]  }
  0x56   :  { %s80_s21 = sshll.u32 %s1404_s20, 4  ;;  %s108_s24 = sshll.u32 %s1405_s22, 4  ;;  %s81_s21 = int_to_ptr.vmem [resolvable:$true] %s80_s21  ;;  %s109_s24 = int_to_ptr.vmem [resolvable:$true] %s108_s24 }
  0x57   :  { %s1321_s25 = scalar_lea.hbm %s1680_s7, 2048 }
  0x58   :  { %p1322_p12 = scmp.ne.s32.totalorder %s1680_s7, %s1321_s25  ;;  %p1325_p13 = scmp.lt.u32.totalorder %s1321_s25, %s1680_s7 }
  0x5a   :  { %p1327_p0 = pnand %p1325_p13, %p1322_p12 }
  0x5c   :  { %1330 = shalt.err (!%p1327_p0)
}
  0x5d   :  { %s1331_s3 = scalar_lea.vmem %s81_s21, 2048  ;;  %p1336_p2 = scmp.lt.s32.totalorder %s81_s21, %s81_s21 }
  0x5e   :  { %p1332_p1 = scmp.ne.s32.totalorder %s81_s21, %s1331_s3  ;;  %p1337_p3 = scmp.lt.s32.totalorder %s1331_s3, %s1331_s3 }
  0x60   :  { %p1338_p4 = por %p1337_p3, %p1336_p2 }
  0x62   :  { %p1339_p5 = pnand %p1338_p4, %p1332_p1 }
  0x64   :  { %1342 = shalt.err (!%p1339_p5)
}
  0x65   :  { %86 = dma.hbm_to_vmem [thread:$0]  %s1680_s7, 2048, %s81_s21, [#allocation10], %s1398_s18, %s1398_s18, %s1399_s19  }
  0x66   :  { %s1343_s26 = scalar_lea.hbm %s1684_s11, 2048 }
  0x67   :  { %p1344_p6 = scmp.ne.s32.totalorder %s1684_s11, %s1343_s26  ;;  %p1347_p7 = scmp.lt.u32.totalorder %s1343_s26, %s1684_s11 }
  0x69   :  { %p1349_p8 = pnand %p1347_p7, %p1344_p6 }
  0x6b   :  { %1352 = shalt.err (!%p1349_p8)
}
  0x6c   :  { %s1353_s22 = scalar_lea.vmem %s109_s24, 2048  ;;  %p1358_p10 = scmp.lt.s32.totalorder %s109_s24, %s109_s24 }
  0x6d   :  { %p1354_p9 = scmp.ne.s32.totalorder %s109_s24, %s1353_s22  ;;  %p1359_p11 = scmp.lt.s32.totalorder %s1353_s22, %s1353_s22 }
  0x6f   :  { %p1360_p12 = por %p1359_p11, %p1358_p10 }
  0x71   :  { %p1361_p13 = pnand %p1360_p12, %p1354_p9 }
  0x73   :  { %1364 = shalt.err (!%p1361_p13)
}
  0x74   :  { %114 = dma.hbm_to_vmem [thread:$0]  %s1684_s11, 2048, %s109_s24, [#allocation13], %s1398_s18, %s1398_s18, %s1399_s19  }
  0x75   :  { %1387 = dma.done.wait [#allocation4], 128  }
  0x76   :  { %1388 = vsyncadd [#allocation4], 4294967168 }
  0x77   :  { %1389 = dma.done.wait [#allocation7], 4096  }
  0x78   :  { %1390 = vsyncadd [#allocation7], 4294963200 }
  0x79   :  { %1391 = dma.done.wait [#allocation10], 4096  }
  0x7a   :  { %1392 = vsyncadd [#allocation10], 4294963200 }
  0x7b   :  { %1393 = dma.done.wait [#allocation13], 4096  }
  0x7c   :  { %1394 = vsyncadd [#allocation13], 4294963200  ;;  %v1406_v0 = vmov 0.0|0.0   ;;  %v1407_v1 = vmov 0.0   ;;  %vm1408_vm0 = vmmov 0   ;;  %v143_v2 = vld [vmem:[#allocation6] sm:$0xff] }
  0x7d   :  { %1054 = vmatprep.subr.bf16.mxu0 %v1406_v0  ;;  %138 = vst [vmem:[#allocation2] sm:$0xff] %v1407_v1  ;;  %876 = vmatprep.mubr.msk.f32.mxu0 %vm1408_vm0, %v1407_v1  ;;  %v144_v3 = vld [vmem:[#allocation6 + $0x8] sm:$0xff]  ;;  %v145_v4 = vld [vmem:[#allocation6 + $0x10] sm:$0xff]  ;;  %v146_v6 = vld [vmem:[#allocation6 + $0x18] sm:$0xff]  ;;  %vm140_vm1 = vcmask 130048   ;;  %s1409_s29 = smov [#allocation15]  }
  0x7e   :  { %1078 = vmatprep.subr.bf16.mxu1 %v1406_v0  ;;  %911 = vmatprep.mubr.msk.f32.mxu1 %vm1408_vm0, %v1407_v1  ;;  %v1055_v5 = vpack.c.bf16 %v144_v3, %v143_v2  ;;  %v1058_v7 = vpack.c.bf16 %v146_v6, %v145_v4  ;;  %v147_v8 = vld [vmem:[#allocation6 + $0x20] sm:$0xff]  ;;  %v148_v9 = vld [vmem:[#allocation6 + $0x28] sm:$0xff]  ;;  %v139_v10 = vld [vmem:[#allocation3] sm:$0xff]  ;;  %s724_s30 = sshll.u32 %s1409_s29, 4  ;;  %vm716_vm7 = vcmask 64512   ;;  %s725_s30 = int_to_ptr.vmem [resolvable:$true] %s724_s30 }
  0x7f   :  { %v239_v11 = vld [vmem:[#allocation8] sm:$0xff]  ;;  %141 = vst.msk [vmem:[#allocation2] sm:$0xff] %vm140_vm1, %v139_v10  ;;  %v240_v12 = vld [vmem:[#allocation8 + $0x8] sm:$0xff]  ;;  %v241_v13 = vld [vmem:[#allocation8 + $0x10] sm:$0xff]  ;;  %v1061_v15 = vpack.c.bf16 %v148_v9, %v147_v8  ;;  %p1370_p1 = scmp.lt.s32.totalorder %s725_s30, %s725_s30 }
  0x80   :  { %1056 = vmatpush3.bf16.msra.mxu0 %v1055_v5  ;;  %v242_v14 = vld [vmem:[#allocation8 + $0x18] sm:$0xff]  ;;  %v1079_v16 = vpack.c.bf16 %v240_v12, %v239_v11  ;;  %v149_v17 = vld [vmem:[#allocation6 + $0x30] sm:$0xff]  ;;  %v243_v20 = vld [vmem:[#allocation8 + $0x20] sm:$0xff] }
  0x81   :  { %1057 = vmatprep.subr.bf16.mxu0 %v1406_v0  ;;  %v150_v18 = vld [vmem:[#allocation6 + $0x38] sm:$0xff]  ;;  %v1082_v19 = vpack.c.bf16 %v242_v14, %v241_v13  ;;  %v244_v21 = vld [vmem:[#allocation8 + $0x28] sm:$0xff]  ;;  %v151_v23 = vld [vmem:[#allocation6 + $0x40] sm:$0xff] }
  0x82   :  { %1080 = vmatpush3.bf16.msra.mxu1 %v1079_v16  ;;  %v1064_v22 = vpack.c.bf16 %v150_v18, %v149_v17  ;;  %v152_v24 = vld [vmem:[#allocation6 + $0x48] sm:$0xff]  ;;  %v1085_v25 = vpack.c.bf16 %v244_v21, %v243_v20  ;;  %v245_v26 = vld [vmem:[#allocation8 + $0x30] sm:$0xff]  ;;  %v246_v27 = vld [vmem:[#allocation8 + $0x38] sm:$0xff] }
  0x83   :  { %1081 = vmatprep.subr.bf16.mxu1 %v1406_v0  ;;  %v1067_v28 = vpack.c.bf16 %v152_v24, %v151_v23  ;;  %v153_v29 = vld [vmem:[#allocation6 + $0x50] sm:$0xff]  ;;  %v154_v30 = vld [vmem:[#allocation6 + $0x58] sm:$0xff]  ;;  %v1088_v31 = vpack.c.bf16 %v246_v27, %v245_v26  ;;  %v247_v32 = vld [vmem:[#allocation8 + $0x40] sm:$0xff] }
  0x84   :  { %1059 = vmatpush3.bf16.msra.mxu0 %v1058_v7  ;;  %v248_v33 = vld [vmem:[#allocation8 + $0x48] sm:$0xff]  ;;  %v1070_v34 = vpack.c.bf16 %v154_v30, %v153_v29  ;;  %v155_v35 = vld [vmem:[#allocation6 + $0x60] sm:$0xff]  ;;  %v249_v38 = vld [vmem:[#allocation8 + $0x50] sm:$0xff] }
  0x85   :  { %1060 = vmatprep.subr.bf16.mxu0 %v1406_v0  ;;  %v156_v36 = vld [vmem:[#allocation6 + $0x68] sm:$0xff]  ;;  %v1091_v37 = vpack.c.bf16 %v248_v33, %v247_v32  ;;  %v250_v39 = vld [vmem:[#allocation8 + $0x58] sm:$0xff]  ;;  %v157_v41 = vld [vmem:[#allocation6 + $0x70] sm:$0xff] }
  0x86   :  { %1083 = vmatpush3.bf16.msra.mxu1 %v1082_v19  ;;  %v1073_v40 = vpack.c.bf16 %v156_v36, %v155_v35  ;;  %v158_v42 = vld [vmem:[#allocation6 + $0x78] sm:$0xff]  ;;  %v1094_v43 = vpack.c.bf16 %v250_v39, %v249_v38  ;;  %v251_v44 = vld [vmem:[#allocation8 + $0x60] sm:$0xff]  ;;  %v252_v45 = vld [vmem:[#allocation8 + $0x68] sm:$0xff] }
  0x87   :  { %1084 = vmatprep.subr.bf16.mxu1 %v1406_v0  ;;  %v1076_v46 = vpack.c.bf16 %v158_v42, %v157_v41  ;;  %v1097_v47 = vpack.c.bf16 %v252_v45, %v251_v44  ;;  %v142_v48 = vld [vmem:[#allocation2] sm:$0xff]  ;;  %v254_v50 = vld [vmem:[#allocation8 + $0x78] sm:$0xff]  ;;  %v335_v52 = vld [vmem:[#allocation9] sm:$0xff] }
  0x88   :  { %1062 = vmatpush3.bf16.msra.mxu0 %v1061_v15  ;;  %v253_v49 = vld [vmem:[#allocation8 + $0x70] sm:$0xff]  ;;  %v336_v53 = vld [vmem:[#allocation9 + $0x8] sm:$0xff]  ;;  %v338_v56 = vld [vmem:[#allocation9 + $0x18] sm:$0xff] }
  0x89   :  { %1063 = vmatprep.subr.bf16.mxu0 %v1406_v0  ;;  %v1100_v51 = vpack.c.bf16 %v254_v50, %v253_v49  ;;  %v337_v54 = vld [vmem:[#allocation9 + $0x10] sm:$0xff]  ;;  %v1103_v55 = vpack.c.bf16 %v336_v53, %v335_v52  ;;  %v339_v58 = vld [vmem:[#allocation9 + $0x20] sm:$0xff]  ;;  %v340_v59 = vld [vmem:[#allocation9 + $0x28] sm:$0xff] }
  0x8a   :  { %1086 = vmatpush3.bf16.msra.mxu1 %v1085_v25  ;;  %v1106_v57 = vpack.c.bf16 %v338_v56, %v337_v54  ;;  %v1109_v60 = vpack.c.bf16 %v340_v59, %v339_v58  ;;  %v341_v61 = vld [vmem:[#allocation9 + $0x30] sm:$0xff]  ;;  %v342_v62 = vld [vmem:[#allocation9 + $0x38] sm:$0xff]  ;;  %v343_v2 = vld [vmem:[#allocation9 + $0x40] sm:$0xff] }
  0x8b   :  { %1087 = vmatprep.subr.bf16.mxu1 %v1406_v0  ;;  %v1112_v63 = vpack.c.bf16 %v342_v62, %v341_v61  ;;  %v344_v3 = vld [vmem:[#allocation9 + $0x48] sm:$0xff]  ;;  %v345_v5 = vld [vmem:[#allocation9 + $0x50] sm:$0xff]  ;;  %v346_v6 = vld [vmem:[#allocation9 + $0x58] sm:$0xff] }
  0x8c   :  { %1065 = vmatpush3.bf16.msra.mxu0 %v1064_v22  ;;  %v1115_v4 = vpack.c.bf16 %v344_v3, %v343_v2  ;;  %v1118_v7 = vpack.c.bf16 %v346_v6, %v345_v5  ;;  %v347_v8 = vld [vmem:[#allocation9 + $0x60] sm:$0xff]  ;;  %v348_v9 = vld [vmem:[#allocation9 + $0x68] sm:$0xff]  ;;  %v736_v11 = vld [vmem:[%s1675_s2] ss:$0 sm:$0xff] }
  0x8d   :  { %1066 = vmatprep.subr.bf16.mxu0 %v1406_v0  ;;  %v1121_v10 = vpack.c.bf16 %v348_v9, %v347_v8  ;;  %v349_v17 = vld [vmem:[#allocation9 + $0x70] sm:$0xff]  ;;  %v350_v18 = vld [vmem:[#allocation9 + $0x78] sm:$0xff]  ;;  %v431_v20 = vld [vmem:[#allocation11] sm:$0xff] }
  0x8e   :  { %1089 = vmatpush3.bf16.msra.mxu1 %v1088_v31  ;;  %v1124_v19 = vpack.c.bf16 %v350_v18, %v349_v17  ;;  %v432_v21 = vld [vmem:[#allocation11 + $0x8] sm:$0xff]  ;;  %v433_v22 = vld [vmem:[#allocation11 + $0x10] sm:$0xff]  ;;  %v434_v24 = vld [vmem:[#allocation11 + $0x18] sm:$0xff] }
  0x8f   :  { %1090 = vmatprep.subr.bf16.mxu1 %v1406_v0  ;;  %v1127_v23 = vpack.c.bf16 %v432_v21, %v431_v20  ;;  %v1130_v25 = vpack.c.bf16 %v434_v24, %v433_v22  ;;  %v435_v26 = vld [vmem:[#allocation11 + $0x20] sm:$0xff]  ;;  %v436_v27 = vld [vmem:[#allocation11 + $0x28] sm:$0xff]  ;;  %v437_v29 = vld [vmem:[#allocation11 + $0x30] sm:$0xff] }
  0x90   :  { %1068 = vmatpush3.bf16.msra.mxu0 %v1067_v28  ;;  %v1133_v28 = vpack.c.bf16 %v436_v27, %v435_v26  ;;  %v438_v30 = vld [vmem:[#allocation11 + $0x38] sm:$0xff]  ;;  %v439_v32 = vld [vmem:[#allocation11 + $0x40] sm:$0xff]  ;;  %v440_v33 = vld [vmem:[#allocation11 + $0x48] sm:$0xff] }
  0x91   :  { %1069 = vmatprep.subr.bf16.mxu0 %v1406_v0  ;;  %v1136_v31 = vpack.c.bf16 %v438_v30, %v437_v29  ;;  %v441_v35 = vld [vmem:[#allocation11 + $0x50] sm:$0xff]  ;;  %v442_v36 = vld [vmem:[#allocation11 + $0x58] sm:$0xff]  ;;  %v443_v38 = vld [vmem:[#allocation11 + $0x60] sm:$0xff] }
  0x92   :  { %1092 = vmatpush3.bf16.msra.mxu1 %v1091_v37  ;;  %v1142_v37 = vpack.c.bf16 %v442_v36, %v441_v35  ;;  %v444_v39 = vld [vmem:[#allocation11 + $0x68] sm:$0xff]  ;;  %v737_v41 = vld [vmem:[%s1677_s4] ss:$0 sm:$0xff]  ;;  %v527_v50 = vld [vmem:[#allocation12] sm:$0xff] }
  0x93   :  { %1093 = vmatprep.subr.bf16.mxu1 %v1406_v0  ;;  %v529_v52 = vld [vmem:[#allocation12 + $0x10] sm:$0xff]  ;;  %v530_v54 = vld [vmem:[#allocation12 + $0x18] sm:$0xff]  ;;  %v531_v56 = vld [vmem:[#allocation12 + $0x20] sm:$0xff] }
  0x94   :  { %1071 = vmatpush3.bf16.msra.mxu0 %v1070_v34  ;;  %v1139_v34 = vpack.c.bf16 %v440_v33, %v439_v32  ;;  %v533_v59 = vld [vmem:[#allocation12 + $0x30] sm:$0xff]  ;;  %v535_v62 = vld [vmem:[#allocation12 + $0x40] sm:$0xff]  ;;  %v626_v22 = vld [vmem:[#allocation14 + $0x18] sm:$0xff] }
  0x95   :  { %1072 = vmatprep.subr.bf16.mxu0 %v1406_v0  ;;  %v537_v3 = vld [vmem:[#allocation12 + $0x50] sm:$0xff]  ;;  %v539_v6 = vld [vmem:[#allocation12 + $0x60] sm:$0xff]  ;;  %v630_v27 = vld [vmem:[#allocation14 + $0x38] sm:$0xff] }
  0x96   :  { %1095 = vmatpush3.bf16.msra.mxu1 %v1094_v43  ;;  %v738_v9 = vld [vmem:[%s1679_s6] ss:$0 sm:$0xff]  ;;  %v623_v18 = vld [vmem:[#allocation14] sm:$0xff]  ;;  %v632_v30 = vld [vmem:[#allocation14 + $0x48] sm:$0xff] }
  0x97   :  { %1096 = vmatprep.subr.bf16.mxu1 %v1406_v0  ;;  %v625_v20 = vld [vmem:[#allocation14 + $0x10] sm:$0xff]  ;;  %v627_v24 = vld [vmem:[#allocation14 + $0x20] sm:$0xff]  ;;  %v634_v33 = vld [vmem:[#allocation14 + $0x58] sm:$0xff] }
  0x98   :  { %1074 = vmatpush3.bf16.msra.mxu0 %v1073_v40  ;;  %v1145_v40 = vpack.c.bf16 %v444_v39, %v443_v38  ;;  %v631_v29 = vld [vmem:[#allocation14 + $0x40] sm:$0xff]  ;;  %v633_v32 = vld [vmem:[#allocation14 + $0x50] sm:$0xff]  ;;  %v636_v36 = vld [vmem:[#allocation14 + $0x68] sm:$0xff] }
  0x99   :  { %1075 = vmatprep.subr.bf16.mxu0 %v1406_v0  ;;  %v635_v35 = vld [vmem:[#allocation14 + $0x60] sm:$0xff]  ;;  %v739_v38 = vld [vmem:[%s1681_s8] ss:$0 sm:$0xff] }
  0x9a   :  { %1098 = vmatpush3.bf16.msra.mxu1 %v1097_v47  ;;  %v445_v47 = vld [vmem:[#allocation11 + $0x70] sm:$0xff] }
  0x9b   :  { %1099 = vmatprep.subr.bf16.mxu1 %v1406_v0 }
  0x9c   :  { %1077 = vmatpush3.bf16.msra.mxu0 %v1076_v46 }
  0x9d   :  { %1102 = vmatprep.subr.bf16.mxu0 %v1406_v0 }
  0x9e   :  { %1101 = vmatpush3.bf16.msra.mxu1 %v1100_v51  ;;  %v528_v51 = vld [vmem:[#allocation12 + $0x8] sm:$0xff] }
  0x9f   :  { %877 = vmatmul.mubr.f32.vlgmr.msra.gmra.mrb[0].mxu0 %v142_v48  ;;  %1126 = vmatprep.subr.bf16.mxu1 %v1406_v0  ;;  %v446_v48 = vld [vmem:[#allocation11 + $0x78] sm:$0xff]  ;;  %v1151_v53 = vpack.c.bf16 %v528_v51, %v527_v50 }
  0xa0   :  { %946 = vmatprep.mubr.msk.f32.mxu0 %vm1408_vm0, %v1407_v1  ;;  %1104 = vmatpush3.bf16.msra.mxu0 %v1103_v55  ;;  %v1148_v49 = vpack.c.bf16 %v446_v48, %v445_v47  ;;  %v1154_v55 = vpack.c.bf16 %v530_v54, %v529_v52  ;;  %v740_v47 = vld [vmem:[%s1683_s10] ss:$0 sm:$0xff]  ;;  %s1365_s10 = scalar_lea.vmem %s725_s30, 128 }
  0xa1   :  { %1105 = vmatprep.subr.bf16.mxu0 %v1406_v0  ;;  %v741_v52 = vld [vmem:[%s1685_s12] ss:$0 sm:$0xff]  ;;  %p1366_p0 = scmp.ne.s32.totalorder %s725_s30, %s1365_s10  ;;  %p1371_p2 = scmp.lt.s32.totalorder %s1365_s10, %s1365_s10 }
  0xa3   :  { %p1372_p3 = por %p1371_p2, %p1370_p1 }
  0xa4   :  { %1107 = vmatpush3.bf16.msra.mxu0 %v1106_v57  ;;  %v532_v57 = vld [vmem:[#allocation12 + $0x28] sm:$0xff] }
  0xa5   :  { %1108 = vmatprep.subr.bf16.mxu0 %v1406_v0  ;;  %v1157_v58 = vpack.c.bf16 %v532_v57, %v531_v56  ;;  %p1373_p4 = pnand %p1372_p3, %p1366_p0 }
  0xa8   :  { %1110 = vmatpush3.bf16.msra.mxu0 %v1109_v60  ;;  %v534_v60 = vld [vmem:[#allocation12 + $0x38] sm:$0xff] }
  0xa9   :  { %1111 = vmatprep.subr.bf16.mxu0 %v1406_v0  ;;  %v1160_v61 = vpack.c.bf16 %v534_v60, %v533_v59 }
  0xac   :  { %1113 = vmatpush3.bf16.msra.mxu0 %v1112_v63  ;;  %v536_v63 = vld [vmem:[#allocation12 + $0x48] sm:$0xff] }
  0xad   :  { %1114 = vmatprep.subr.bf16.mxu0 %v1406_v0  ;;  %v1163_v2 = vpack.c.bf16 %v536_v63, %v535_v62 }
  0xb0   :  { %1116 = vmatpush3.bf16.msra.mxu0 %v1115_v4  ;;  %v538_v4 = vld [vmem:[#allocation12 + $0x58] sm:$0xff] }
  0xb1   :  { %1117 = vmatprep.subr.bf16.mxu0 %v1406_v0  ;;  %v1166_v5 = vpack.c.bf16 %v538_v4, %v537_v3 }
  0xb4   :  { %1119 = vmatpush3.bf16.msra.mxu0 %v1118_v7  ;;  %v540_v7 = vld [vmem:[#allocation12 + $0x68] sm:$0xff] }
  0xb5   :  { %1120 = vmatprep.subr.bf16.mxu0 %v1406_v0  ;;  %v1169_v8 = vpack.c.bf16 %v540_v7, %v539_v6 }
  0xb8   :  { %1122 = vmatpush3.bf16.msra.mxu0 %v1121_v10 }
  0xb9   :  { %1123 = vmatprep.subr.bf16.mxu0 %v1406_v0 }
  0xbc   :  { %1125 = vmatpush3.bf16.msra.mxu0 %v1124_v19  ;;  %v624_v19 = vld [vmem:[#allocation14 + $0x8] sm:$0xff] }
  0xbd   :  { %1150 = vmatprep.subr.bf16.mxu0 %v1406_v0  ;;  %v1175_v21 = vpack.c.bf16 %v624_v19, %v623_v18 }
 0x172   :  { %v232_v12 = vpop.f32.mrb[0].mxu0 }
 0x173   :  { %v233_v13 = vadd.f32 %v736_v11, %v232_v12  ;;  %v878_v14 = vpop.f32.mrb[1].mxu0 }
 0x175   :  { %v237_v15 = vmul.f32 0.01, %v233_v13  ;;  %vm236_vm2 = vcmp.gt.f32.partialorder %v233_v13, 0.0 }
 0x177   :  { %v238_v16 = vsel %vm236_vm2, %v233_v13, %v237_v15  ;;  %v541_v15 = vld [vmem:[#allocation12 + $0x70] sm:$0xff] }
 0x178   :  { %912 = vmatmul.mubr.f32.vlgmr.msra.gmra.mrb[0].mxu1 %v238_v16  ;;  %v542_v16 = vld [vmem:[#allocation12 + $0x78] sm:$0xff] }
 0x179   :  { %981 = vmatprep.mubr.msk.f32.mxu1 %vm1408_vm0, %v1407_v1  ;;  %1128 = vmatpush3.bf16.msra.mxu1 %v1127_v23  ;;  %v1172_v17 = vpack.c.bf16 %v542_v16, %v541_v15  ;;  %v1178_v23 = vpack.c.bf16 %v626_v22, %v625_v20 }
 0x17a   :  { %1129 = vmatprep.subr.bf16.mxu1 %v1406_v0 }
 0x17d   :  { %1131 = vmatpush3.bf16.msra.mxu1 %v1130_v25  ;;  %v628_v25 = vld [vmem:[#allocation14 + $0x28] sm:$0xff] }
 0x17e   :  { %1132 = vmatprep.subr.bf16.mxu1 %v1406_v0  ;;  %v1181_v26 = vpack.c.bf16 %v628_v25, %v627_v24 }
 0x181   :  { %1134 = vmatpush3.bf16.msra.mxu1 %v1133_v28 }
 0x182   :  { %1135 = vmatprep.subr.bf16.mxu1 %v1406_v0 }
 0x185   :  { %1137 = vmatpush3.bf16.msra.mxu1 %v1136_v31  ;;  %v1187_v31 = vpack.c.bf16 %v632_v30, %v631_v29 }
 0x186   :  { %1138 = vmatprep.subr.bf16.mxu1 %v1406_v0 }
 0x189   :  { %1140 = vmatpush3.bf16.msra.mxu1 %v1139_v34  ;;  %v1190_v34 = vpack.c.bf16 %v634_v33, %v633_v32 }
 0x18a   :  { %1141 = vmatprep.subr.bf16.mxu1 %v1406_v0 }
 0x18d   :  { %1143 = vmatpush3.bf16.msra.mxu1 %v1142_v37  ;;  %v1193_v37 = vpack.c.bf16 %v636_v36, %v635_v35 }
 0x18e   :  { %1144 = vmatprep.subr.bf16.mxu1 %v1406_v0 }
 0x191   :  { %1146 = vmatpush3.bf16.msra.mxu1 %v1145_v40 }
 0x192   :  { %1147 = vmatprep.subr.bf16.mxu1 %v1406_v0 }
 0x195   :  { %1149 = vmatpush3.bf16.msra.mxu1 %v1148_v49 }
 0x196   :  { %1174 = vmatprep.subr.bf16.mxu1 %v1406_v0 }
 0x24b   :  { %v328_v42 = vpop.f32.mrb[0].mxu1 }
 0x24c   :  { %v329_v43 = vadd.f32 %v737_v41, %v328_v42  ;;  %v913_v44 = vpop.f32.mrb[1].mxu1 }
 0x24d   :  { %v637_v44 = vld [vmem:[#allocation14 + $0x70] sm:$0xff] }
 0x24e   :  { %vm332_vm3 = vcmp.gt.f32.partialorder %v329_v43, 0.0  ;;  %v333_v45 = vmul.f32 0.01, %v329_v43 }
 0x250   :  { %v334_v46 = vsel %vm332_vm3, %v329_v43, %v333_v45  ;;  %v638_v45 = vld [vmem:[#allocation14 + $0x78] sm:$0xff] }
 0x251   :  { %947 = vmatmul.mubr.f32.vlgmr.msra.gmra.mrb[2].mxu0 %v334_v46  ;;  %v1196_v46 = vpack.c.bf16 %v638_v45, %v637_v44 }
 0x252   :  { %1016 = vmatprep.mubr.msk.f32.mxu0 %vm1408_vm0, %v1407_v1  ;;  %1152 = vmatpush3.bf16.msra.mxu0 %v1151_v53 }
 0x253   :  { %1153 = vmatprep.subr.bf16.mxu0 %v1406_v0 }
 0x256   :  { %1155 = vmatpush3.bf16.msra.mxu0 %v1154_v55 }
 0x257   :  { %1156 = vmatprep.subr.bf16.mxu0 %v1406_v0 }
 0x25a   :  { %1158 = vmatpush3.bf16.msra.mxu0 %v1157_v58 }
 0x25b   :  { %1159 = vmatprep.subr.bf16.mxu0 %v1406_v0 }
 0x25e   :  { %1161 = vmatpush3.bf16.msra.mxu0 %v1160_v61 }
 0x25f   :  { %1162 = vmatprep.subr.bf16.mxu0 %v1406_v0 }
 0x262   :  { %1164 = vmatpush3.bf16.msra.mxu0 %v1163_v2 }
 0x263   :  { %1165 = vmatprep.subr.bf16.mxu0 %v1406_v0 }
 0x266   :  { %1167 = vmatpush3.bf16.msra.mxu0 %v1166_v5 }
 0x267   :  { %1168 = vmatprep.subr.bf16.mxu0 %v1406_v0 }
 0x26a   :  { %1170 = vmatpush3.bf16.msra.mxu0 %v1169_v8 }
 0x26b   :  { %1171 = vmatprep.subr.bf16.mxu0 %v1406_v0 }
 0x26e   :  { %1173 = vmatpush3.bf16.msra.mxu0 %v1172_v17 }
 0x324   :  { %v424_v10 = vpop.f32.mrb[2].mxu0 }
 0x325   :  { %v425_v11 = vadd.f32 %v738_v9, %v424_v10  ;;  %v948_v12 = vpop.f32.mrb[3].mxu0 }
 0x327   :  { %vm428_vm4 = vcmp.gt.f32.partialorder %v425_v11, 0.0  ;;  %v429_v13 = vmul.f32 0.01, %v425_v11 }
 0x329   :  { %v430_v14 = vsel %vm428_vm4, %v425_v11, %v429_v13 }
 0x32a   :  { %982 = vmatmul.mubr.f32.vlgmr.msra.gmra.mrb[2].mxu1 %v430_v14 }
 0x32b   :  { %1051 = vmatprep.mubr.msk.f32.mxu1 %vm1408_vm0, %v1407_v1  ;;  %1176 = vmatpush3.bf16.msra.mxu1 %v1175_v21  ;;  %v629_v1 = vld [vmem:[#allocation14 + $0x30] sm:$0xff] }
 0x32c   :  { %1177 = vmatprep.subr.bf16.mxu1 %v1406_v0  ;;  %v1184_v28 = vpack.c.bf16 %v630_v27, %v629_v1 }
 0x32f   :  { %1179 = vmatpush3.bf16.msra.mxu1 %v1178_v23 }
 0x330   :  { %1180 = vmatprep.subr.bf16.mxu1 %v1406_v0 }
 0x333   :  { %1182 = vmatpush3.bf16.msra.mxu1 %v1181_v26 }
 0x334   :  { %1183 = vmatprep.subr.bf16.mxu1 %v1406_v0 }
 0x337   :  { %1185 = vmatpush3.bf16.msra.mxu1 %v1184_v28 }
 0x338   :  { %1186 = vmatprep.subr.bf16.mxu1 %v1406_v0 }
 0x33b   :  { %1188 = vmatpush3.bf16.msra.mxu1 %v1187_v31 }
 0x33c   :  { %1189 = vmatprep.subr.bf16.mxu1 %v1406_v0 }
 0x33f   :  { %1191 = vmatpush3.bf16.msra.mxu1 %v1190_v34 }
 0x340   :  { %1192 = vmatprep.subr.bf16.mxu1 %v1406_v0 }
 0x343   :  { %1194 = vmatpush3.bf16.msra.mxu1 %v1193_v37 }
 0x344   :  { %1195 = vmatprep.subr.bf16.mxu1 %v1406_v0 }
 0x347   :  { %1197 = vmatpush3.bf16.msra.mxu1 %v1196_v46 }
 0x3fd   :  { %v520_v39 = vpop.f32.mrb[2].mxu1 }
 0x3fe   :  { %v521_v40 = vadd.f32 %v739_v38, %v520_v39  ;;  %v983_v41 = vpop.f32.mrb[3].mxu1 }
 0x400   :  { %vm524_vm5 = vcmp.gt.f32.partialorder %v521_v40, 0.0  ;;  %v525_v42 = vmul.f32 0.01, %v521_v40 }
 0x402   :  { %v526_v43 = vsel %vm524_vm5, %v521_v40, %v525_v42 }
 0x403   :  { %1017 = vmatmul.mubr.f32.vlgmr.msra.gmra.mrb[4].mxu0 %v526_v43 }
 0x4d6   :  { %v616_v0 = vpop.f32.mrb[4].mxu0 }
 0x4d7   :  { %v617_v48 = vadd.f32 %v740_v47, %v616_v0  ;;  %v1018_v49 = vpop.f32.mrb[5].mxu0 }
 0x4d9   :  { %vm620_vm6 = vcmp.gt.f32.partialorder %v617_v48, 0.0  ;;  %v621_v50 = vmul.f32 0.01, %v617_v48 }
 0x4db   :  { %v622_v51 = vsel %vm620_vm6, %v617_v48, %v621_v50 }
 0x4dc   :  { %1052 = vmatmul.mubr.f32.vlgmr.msra.gmra.mrb[4].mxu1 %v622_v51 }
 0x5af   :  { %v712_v53 = vpop.f32.mrb[4].mxu1 }
 0x5b0   :  { %v713_v54 = vadd.f32 %v741_v52, %v712_v53  ;;  %v1053_v55 = vpop.f32.mrb[5].mxu1 }
 0x5b2   :  { %717 = vst.msk [vmem:[#allocation15] sm:$0xff] %vm716_vm7, %v713_v54 }
 0x5b3   :  { %1376 = shalt.err (!%p1373_p4)
}
 0x5b4   :  { %s1377_s1 = scalar_lea.hbm %s1686_s13, 128 }
 0x5b5   :  { %p1378_p5 = scmp.ne.s32.totalorder %s1686_s13, %s1377_s1  ;;  %p1381_p6 = scmp.lt.u32.totalorder %s1377_s1, %s1686_s13 }
 0x5b7   :  { %p1383_p7 = pnand %p1381_p6, %p1378_p5 }
 0x5b9   :  { %1386 = shalt.err (!%p1383_p7)
}
 0x5ba   :  { %727 = dma.vmem_to_hbm [thread:$0]  %s725_s30, 128, %s1686_s13, [#allocation5]  }
 0x5bb   :  { %1395 = dma.done.wait [#allocation5], 128  }
 0x5bc   :  { %1396 = vsyncadd [#allocation5], 4294967168 }
 0x5bd   :  { %731 = vsyncpa [#allocation4], 1 }
 0x5be   :  { %732 = vsyncpa [#allocation7], 1 }
 0x5bf   :  { %733 = vsyncpa [#allocation10], 1 }
 0x5c0   :  { %734 = vsyncpa [#allocation13], 1 }
 0x5c1   :  { %735 = vsyncpa [#allocation5], 1 }

</bundles_post_ra>
